<compile_context>
chip_gen: v7x
topology: tpu7x:2x2x1
jax: 0.10.0
libtpu: 0.0.40
codegen_flags: <defaults>
</compile_context>

<pallas_src>
import jax
import jax.numpy as jnp
from jax.experimental import pallas as pl
from jax.experimental.pallas import tpu as pltpu

_LANES = 128                 # lane width of a vreg
_SMALL_N_THRESHOLD = 1 << 16  # below this, plain fused XLA wins over a kernel launch


def _max_row_tile():
    """Generation-aware row tile: bigger on v7x (faster HBM, same step overhead)."""
    row_tile = 2048  # (2048, 128) f32 block = 1 MiB per pipeline buffer
    try:
        info = pltpu.get_tpu_info()
        ver = getattr(info, "chip_version", None)
        if ver is not None and "7" in str(ver):
            row_tile = 4096
    except Exception:
        pass
    return row_tile


def _affine_kernel(w_ref, b_ref, x_ref, o_ref):
    # w_ref / b_ref: (1,) f32 scalars in SMEM; x_ref/o_ref: (row_tile, 128) VMEM tiles.
    w = w_ref[0]
    b = b_ref[0]
    y = x_ref[...].astype(jnp.float32) * w + b
    o_ref[...] = y.astype(o_ref.dtype)


def _dummy_model_forward_pallas(x, weight, bias):
    n, in_features = x.shape
    assert in_features == 1

    # Scalars for the SMEM path (compute always in f32, like the PyTorch module).
    w = weight.reshape(1).astype(jnp.float32)
    b = bias.reshape(1).astype(jnp.float32)

    total = n
    rows = pl.cdiv(total, _LANES)
    padded_total = rows * _LANES

    # Lane-dense slab in the *input* dtype; pad only when N isn't lane-aligned.
    if padded_total == total:
        slab = x.reshape(rows, _LANES)
    else:
        flat = jnp.pad(x.reshape(-1), (0, padded_total - total))
        slab = flat.reshape(rows, _LANES)

    # Dtype-aware sublane rounding (bf16 packs 16 rows per vreg).
    sublane = 16 if slab.dtype == jnp.bfloat16 else 8
    row_tile = min(_max_row_tile(), ((rows + sublane - 1) // sublane) * sublane)

    grid = (pl.cdiv(rows, row_tile),)  # ragged last block handled by Pallas masking

    out = pl.pallas_call(
        _affine_kernel,
        out_shape=jax.ShapeDtypeStruct((rows, _LANES), x.dtype),
        grid=grid,
        in_specs=[
            pl.BlockSpec(memory_space=pltpu.MemorySpace.SMEM),   # weight scalar
            pl.BlockSpec(memory_space=pltpu.MemorySpace.SMEM),   # bias scalar
            pl.BlockSpec((row_tile, _LANES), lambda i: (i, 0)),  # x tiles
        ],
        out_specs=pl.BlockSpec((row_tile, _LANES), lambda i: (i, 0)),
        compiler_params=pltpu.CompilerParams(
            dimension_semantics=("parallel",),   # shard rows across TCs on v7x
            vmem_limit_bytes=32 * 1024 * 1024,   # ~8 MiB max actual use, ample headroom
        ),
    )(w, b, slab)

    if padded_total == total:
        return out.reshape(n, 1)
    return out.reshape(-1)[:total].reshape(n, 1)


def dummy_model_forward(x, weight, bias, *, force_pallas=False):
    """DummyModel forward: y = x @ W.T + b with W (1, 1), b (1,).

    x: (N, 1) array. Returns (N, 1) array in x.dtype.
    """
    n, in_features = x.shape
    assert in_features == 1
    if not force_pallas and n < _SMALL_N_THRESHOLD:
        # Tiny batches: a fused XLA mul-add beats the pallas_call launch overhead.
        w = weight.reshape(()).astype(jnp.float32)
        b = bias.reshape(()).astype(jnp.float32)
        return (x.astype(jnp.float32) * w + b).astype(x.dtype)
    return _dummy_model_forward_pallas(x, weight, bias)


if __name__ == "__main__":
    key = jax.random.PRNGKey(0)
    kx, kw, kb, kx2, kx3 = jax.random.split(key, 5)

    # nn.Linear(1, 1) init: U(-1/sqrt(in_features), 1/sqrt(in_features)) = U(-1, 1).
    weight = jax.random.uniform(kw, (1, 1), jnp.float32, minval=-1.0, maxval=1.0)
    bias = jax.random.uniform(kb, (1,), jnp.float32, minval=-1.0, maxval=1.0)

    # Small test matching the module (batch=8, in_features=1): force the Pallas path.
    x = jax.random.normal(kx, (8, 1), jnp.float32)
    y = dummy_model_forward(x, weight, bias, force_pallas=True)
    jax.block_until_ready(y)
    y_ref = x @ weight.T + bias
    assert y.shape == (8, 1)
    assert jnp.allclose(y, y_ref, atol=1e-6), (y, y_ref)

    # Default dispatch (plain XLA fast path) must agree too.
    y_fast = dummy_model_forward(x, weight, bias)
    jax.block_until_ready(y_fast)
    assert jnp.allclose(y_fast, y_ref, atol=1e-6)

    # Lane-aligned path (N % 128 == 0): no padding, no output slice.
    x2 = jax.random.normal(kx2, (1024, 1), jnp.float32)
    y2 = dummy_model_forward(x2, weight, bias, force_pallas=True)
    jax.block_until_ready(y2)
    y2_ref = x2 @ weight.T + bias
    assert y2.shape == (1024, 1)
    assert jnp.allclose(y2, y2_ref, atol=1e-6)

    # Unaligned path (padding + output slice).
    x3 = jax.random.normal(kx3, (1000, 1), jnp.float32)
    y3 = dummy_model_forward(x3, weight, bias, force_pallas=True)
    jax.block_until_ready(y3)
    y3_ref = x3 @ weight.T + bias
    assert y3.shape == (1000, 1)
    assert jnp.allclose(y3, y3_ref, atol=1e-6)

    print("KERNEL_OK")
</pallas_src>

<mosaic_0001>
module attributes {stable_mosaic.version = 11 : i64} {
  func.func @_affine_kernel(%arg0: i32, %arg1: memref<1xf32, #tpu.memory_space<smem>>, %arg2: memref<1xf32, #tpu.memory_space<smem>>, %arg3: memref<8x128xf32, #tpu.memory_space<vmem>>, %arg4: memref<8x128xf32, #tpu.memory_space<vmem>>) attributes {dimension_semantics = [#tpu.dimension_semantics<parallel>], iteration_bounds = array<i64: 1>, scalar_prefetch = 0 : i64, scratch_operands = 0 : i64, tpu.core_type = #tpu.core_type<tc>, window_params = [{transform_indices = @transform_0, window_bounds = array<i64: 1>}, {transform_indices = @transform_1, window_bounds = array<i64: 1>}, {transform_indices = @transform_2, window_bounds = array<i64: 8, 128>}, {transform_indices = @transform_3, window_bounds = array<i64: 8, 128>}]} {
    %c0 = arith.constant 0 : index
    %0 = memref.load %arg1[%c0] : memref<1xf32, #tpu.memory_space<smem>>
    %c0_0 = arith.constant 0 : index
    %1 = memref.load %arg2[%c0_0] : memref<1xf32, #tpu.memory_space<smem>>
    %c0_1 = arith.constant 0 : index
    %c0_2 = arith.constant 0 : index
    %2 = vector.load %arg3[%c0_1, %c0_2] : memref<8x128xf32, #tpu.memory_space<vmem>>, vector<8x128xf32>
    %3 = vector.broadcast %0 : f32 to vector<8x128xf32>
    %4 = arith.mulf %2, %3 : vector<8x128xf32>
    %5 = vector.broadcast %1 : f32 to vector<8x128xf32>
    %6 = arith.addf %4, %5 : vector<8x128xf32>
    %c0_3 = arith.constant 0 : index
    %c0_4 = arith.constant 0 : index
    %7 = vector.load %arg4[%c0_3, %c0_4] : memref<8x128xf32, #tpu.memory_space<vmem>>, vector<8x128xf32>
    tpu.vector_store %arg4[%c0_3, %c0_4], %6 {strides = array<i32>} : memref<8x128xf32, #tpu.memory_space<vmem>>, vector<8x128xf32>,
    return
  }
  func.func @transform_0(%arg0: i32) -> i32 {
    %c0_i32 = arith.constant 0 : i32
    %c0_i32_0 = arith.constant 0 : i32
    return %c0_i32 : i32
  }
  func.func @transform_1(%arg0: i32) -> i32 {
    %c0_i32 = arith.constant 0 : i32
    %c0_i32_0 = arith.constant 0 : i32
    return %c0_i32 : i32
  }
  func.func @transform_2(%arg0: i32) -> (i32, i32) {
    %c0_i32 = arith.constant 0 : i32
    %c0_i32_0 = arith.constant 0 : i32
    return %arg0, %c0_i32 : i32, i32
  }
  func.func @transform_3(%arg0: i32) -> (i32, i32) {
    %c0_i32 = arith.constant 0 : i32
    %c0_i32_0 = arith.constant 0 : i32
    return %arg0, %c0_i32 : i32, i32
  }
}

</mosaic_0001>

<bundles_post_ra>
// kernel: tpu_custom_call.1
= control target key start
LH: loop header
LB: loop body
LE: loop exit
PB: predicated region body
PF: predicated region fallthrough
CT: control target
= control target key end

     0   :  { %10 = vsyncpa [#allocation5], 0  ;;  %s112_s0 = inlined_call_operand.<no memory space> [shape: f32[1], index: 0, kind: input, shape index: {}]   ;;  %s113_s1 = inlined_call_operand.<no memory space> [shape: f32[1], index: 1, kind: input, shape index: {}]   ;;  %s114_s2 = inlined_call_operand.vmem [shape: f32[1,128], index: 2, kind: input, shape index: {}]   ;;  %s115_s3 = inlined_call_operand.hbm [shape: f32[1,128], index: 3, kind: output, shape index: {}]  }
   0x1   :  { %v19_v0 = vld [vmem:[%s114_s2] sm:$0xff]  ;;  %v20_v1 = vstv %s112_s0  ;;  %v22_v2 = vstv %s113_s1 }
   0x2   :  { %v21_v3 = vmul.f32 %v20_v1, %v19_v0 }
   0x4   :  { %v23_v4 = vadd.f32 %v22_v2, %v21_v3 }
   0x6   :  { %24 = vst [vmem:[#allocation4] sm:$0xff] %v23_v4 }
   0x7   :  { %29 = vsyncadd [#allocation5], 112  ;;  %s68_s18 = smov [#allocation4]  }
   0x8   :  { %s30_s19 = sshll.u32 %s68_s18, 4  ;;  %s31_s19 = int_to_ptr.vmem [resolvable:$true] %s30_s19 }
   0x9   :  { %s44_s20 = scalar_lea.vmem %s31_s19, 16  ;;  %s48_s21 = scalar_lea.vmem %s31_s19, 128 }
   0xa   :  { %p45_p0 = scmp.ne.s32.totalorder %s31_s19, %s44_s20  ;;  %p49_p1 = scmp.lt.s32.totalorder %s31_s19, %s31_s19 }
   0xb   :  { %p50_p2 = scmp.lt.s32.totalorder %s48_s21, %s44_s20 }
   0xd   :  { %p51_p3 = por %p50_p2, %p49_p1 }
   0xf   :  { %p52_p4 = pnand %p51_p3, %p45_p0 }
  0x11   :  { %55 = shalt.err (!%p52_p4)
}
  0x12   :  { %s56_s22 = scalar_lea.hbm %s115_s3, 16 }
  0x13   :  { %p57_p5 = scmp.ne.s32.totalorder %s115_s3, %s56_s22  ;;  %p60_p6 = scmp.lt.u32.totalorder %s56_s22, %s115_s3 }
  0x15   :  { %p62_p7 = pnand %p60_p6, %p57_p5 }
  0x17   :  { %65 = shalt.err (!%p62_p7)
}
  0x18   :  { %s69_s26 = smov 16   ;;  %s70_s27 = smov 1  }
  0x19   :  { %36 = dma.vmem_to_hbm [thread:$0]  %s31_s19, 16, %s115_s3, [#allocation5], %s69_s26, %s69_s26, %s70_s27  }
  0x1a   :  { %66 = dma.done.wait [#allocation5], 128  }
  0x1b   :  { %67 = vsyncadd [#allocation5], 4294967168 }
  0x1c   :  { %40 = vsyncpa [#allocation5], 1 }

</bundles_post_ra>
